<compile_context>
chip_gen: v7x
topology: tpu7x:2x2x1
jax: 0.10.0
libtpu: 0.0.40
codegen_flags: <defaults>
</compile_context>

<pallas_src>
import jax
import jax.numpy as jnp
from jax.experimental import pallas as pl
from jax.experimental.pallas import tpu as pltpu


def _round_up(x, m):
    return (x + m - 1) // m * m


def _round_down(x, m):
    return (x // m) * m


def _nll_sum_kernel(pred_ref, mask_ref, out_ref):
    """Accumulates sum_i pred[i, target[i]] into a resident (8, lanes) f32 block.

    pred_ref: (TR, lanes) log-probs in native dtype (lane-dense packed samples)
    mask_ref: (TR, lanes) int8 one-hot selection mask (0 on padding rows)
    out_ref : (8, lanes) f32 partial-sum block for this parallel slice
              (same block index across the reduction axis -> stays in VMEM)
    """
    @pl.when(pl.program_id(1) == 0)
    def _init():
        out_ref[...] = jnp.zeros_like(out_ref)

    pred = pred_ref[...].astype(jnp.float32)                  # (TR, lanes)
    take = mask_ref[...].astype(jnp.float32) > 0.0            # robust int8 -> f32 path
    contrib = jnp.where(take, pred, jnp.float32(0.0))         # NaN-safe on padded rows

    tr, lanes = contrib.shape
    # Fold the tile onto one vreg-sized accumulator: pure elementwise VPU adds
    # (no cross-lane / cross-sublane movement); the tiny final reduce is done
    # once in the wrapper.
    out_ref[...] += jnp.sum(contrib.reshape(tr // 8, 8, lanes), axis=0)


def nll_loss_pallas(pred, target, tans=None, *, tile_bytes=4 << 20, max_parallel=2):
    """F.nll_loss(pred, target) with reduction='mean' as a Pallas TPU kernel."""
    del tans  # unused, matching the PyTorch forward
    n, c = pred.shape
    itemsize = jnp.dtype(pred.dtype).itemsize

    # ---- lane-dense sample packing -------------------------------------------------
    group = max(1, 128 // c) if c <= 128 else 1               # samples per packed row
    lanes = group * c                                         # 128 when C | 128
    n_rows = pl.cdiv(n, group)                                # packed rows
    n_samp_pad = n_rows * group

    tgt = target.astype(jnp.int32)
    if n_samp_pad != n:
        # Rare tail case (N % group != 0): pad samples; padded targets never match.
        pred = jnp.pad(pred, ((0, n_samp_pad - n), (0, 0)))
        tgt = jnp.pad(tgt, ((0, n_samp_pad - n),), constant_values=-1)
    pred_k = pred.reshape(n_rows, lanes)                      # native dtype, lane-dense

    # One-hot selection mask, same lane-dense layout as pred (int8 = 1 B/element).
    cls = jnp.arange(c, dtype=jnp.int32)
    mask_k = (tgt.reshape(n_rows, group, 1) == cls.reshape(1, 1, c)).astype(jnp.int8)
    mask_k = mask_k.reshape(n_rows, lanes)

    # ---- tiling --------------------------------------------------------------------
    row_bytes = lanes * itemsize
    tr = _round_down(max(tile_bytes // row_bytes, 32), 32)    # 32-sublane granularity
    tr = max(32, min(tr, _round_up(n_rows, 32)))
    nb = pl.cdiv(n_rows, tr)
    # Rebalance so the last block is not mostly padding.
    tr = _round_up(pl.cdiv(n_rows, nb), 32)
    nb = pl.cdiv(n_rows, tr)
    # Prefer an even block count so both v7x TensorCores get an equal share.
    if max_parallel >= 2 and nb > 1 and nb % 2 != 0:
        tr2 = _round_up(pl.cdiv(n_rows, nb + 1), 32)
        if pl.cdiv(n_rows, tr2) % 2 == 0:
            tr = tr2
            nb = pl.cdiv(n_rows, tr)

    p_par = 2 if (max_parallel >= 2 and nb >= 2 and nb % 2 == 0) else 1
    s_steps = nb // p_par

    # Pad the (cheap) mask to full tile coverage so any pred padding rows are
    # guaranteed to be masked off (pred itself is NOT copied/padded).
    rows_pad = nb * tr
    if rows_pad != n_rows:
        mask_k = jnp.pad(mask_k, ((0, rows_pad - n_rows), (0, 0)))

    def row_block(p, s):
        return (p * s_steps + s, 0)

    pred_tile_b = tr * lanes * itemsize
    mask_tile_b = tr * lanes
    vmem_limit = max(2 * (pred_tile_b + mask_tile_b) + (4 << 20), 32 << 20)

    cost = pl.CostEstimate(
        flops=3 * n_rows * lanes,
        transcendentals=0,
        bytes_accessed=n_rows * lanes * itemsize + rows_pad * lanes + p_par * 8 * lanes * 4,
    )

    partials = pl.pallas_call(
        _nll_sum_kernel,
        out_shape=jax.ShapeDtypeStruct((p_par * 8, lanes), jnp.float32),
        grid_spec=pltpu.PrefetchScalarGridSpec(
            num_scalar_prefetch=0,
            grid=(p_par, s_steps),
            in_specs=[
                pl.BlockSpec((tr, lanes), row_block),          # pred tile (lane-dense)
                pl.BlockSpec((tr, lanes), row_block),          # int8 one-hot mask tile
            ],
            out_specs=pl.BlockSpec((8, lanes), lambda p, s: (p, 0)),  # per-core partial
        ),
        compiler_params=pltpu.CompilerParams(
            dimension_semantics=("parallel", "arbitrary"),
            vmem_limit_bytes=int(vmem_limit),
        ),
        cost_estimate=cost,
    )(pred_k, mask_k)

    return -jnp.sum(partials) / jnp.float32(n)


if __name__ == "__main__":
    key = jax.random.PRNGKey(0)
    k_pred, k_tgt, k_tans = jax.random.split(key, 3)

    N, C = 256, 16  # flattened (batch * points, num_classes) for segmentation

    logits = jax.random.normal(k_pred, (N, C), dtype=jnp.float32)
    pred = jax.nn.log_softmax(logits, axis=-1)                 # nll_loss expects log-probs
    target = jax.random.randint(k_tgt, (N,), 0, C, dtype=jnp.int32)
    tans = jax.random.normal(k_tans, (N, 3, 3), dtype=jnp.float32)  # unused by forward

    loss = nll_loss_pallas(pred, target, tans)
    loss = jax.block_until_ready(loss)

    # Reference check (plain JAX) to validate semantics.
    ref = -jnp.mean(jnp.take_along_axis(pred, target[:, None], axis=1))
    assert jnp.allclose(loss, ref, atol=1e-5, rtol=1e-5), (loss, ref)

    print("KERNEL_OK")
</pallas_src>

<mosaic_0001>
module attributes {stable_mosaic.version = 11 : i64} {
  func.func @_nll_sum_kernel(%arg0: i32, %arg1: i32, %arg2: memref<32x128xf32, #tpu.memory_space<vmem>>, %arg3: memref<32x128xi8, #tpu.memory_space<vmem>>, %arg4: memref<8x128xf32, #tpu.memory_space<vmem>>) attributes {dimension_semantics = [#tpu.dimension_semantics<parallel>, #tpu.dimension_semantics<arbitrary>], iteration_bounds = array<i64: 1, 1>, scalar_prefetch = 0 : i64, scratch_operands = 0 : i64, tpu.core_type = #tpu.core_type<tc>, window_params = [{transform_indices = @transform_0, window_bounds = array<i64: 32, 128>}, {transform_indices = @transform_1, window_bounds = array<i64: 32, 128>}, {transform_indices = @transform_2, window_bounds = array<i64: 8, 128>}]} {
    %c0_i32 = arith.constant 0 : i32
    %0 = arith.cmpi eq, %arg1, %c0_i32 : i32
    %1 = arith.extui %0 : i1 to i32
    %c0_i32_0 = arith.constant 0 : i32
    %2 = arith.cmpi ne, %1, %c0_i32_0 : i32
    scf.if %2 {
      %cst_10 = arith.constant 0.000000e+00 : f32
      %15 = vector.broadcast %cst_10 : f32 to vector<8x128xf32>
      %c0_11 = arith.constant 0 : index
      %c0_12 = arith.constant 0 : index
      %16 = vector.load %arg4[%c0_11, %c0_12] : memref<8x128xf32, #tpu.memory_space<vmem>>, vector<8x128xf32>
      tpu.vector_store %arg4[%c0_11, %c0_12], %15 {strides = array<i32>} : memref<8x128xf32, #tpu.memory_space<vmem>>, vector<8x128xf32>,
    } else {
    }
    %c0 = arith.constant 0 : index
    %c0_1 = arith.constant 0 : index
    %3 = vector.load %arg2[%c0, %c0_1] : memref<32x128xf32, #tpu.memory_space<vmem>>, vector<32x128xf32>
    %c0_2 = arith.constant 0 : index
    %c0_3 = arith.constant 0 : index
    %4 = vector.load %arg3[%c0_2, %c0_3] : memref<32x128xi8, #tpu.memory_space<vmem>>, vector<32x128xi8>
    %5 = arith.sitofp %4 : vector<32x128xi8> to vector<32x128xf32>
    %cst = arith.constant 0.000000e+00 : f32
    %6 = vector.broadcast %cst : f32 to vector<32x128xf32>
    %7 = arith.cmpf ogt, %5, %6 : vector<32x128xf32>
    %cst_4 = arith.constant 0.000000e+00 : f32
    %8 = vector.broadcast %cst_4 : f32 to vector<32x128xf32>
    %9 = arith.select %7, %3, %8 : vector<32x128xi1>, vector<32x128xf32>
    %c0_5 = arith.constant 0 : index
    %c0_6 = arith.constant 0 : index
    %10 = vector.load %arg4[%c0_5, %c0_6] : memref<8x128xf32, #tpu.memory_space<vmem>>, vector<8x128xf32>
    %11 = vector.shape_cast %9 : vector<32x128xf32> to vector<4x8x128xf32>
    %cst_7 = arith.constant dense<0.000000e+00> : vector<8x128xf32>
    %12 = vector.multi_reduction <add>, %11, %cst_7 [0] : vector<4x8x128xf32> to vector<8x128xf32>
    %13 = arith.addf %10, %12 : vector<8x128xf32>
    %c0_8 = arith.constant 0 : index
    %c0_9 = arith.constant 0 : index
    %14 = vector.load %arg4[%c0_8, %c0_9] : memref<8x128xf32, #tpu.memory_space<vmem>>, vector<8x128xf32>
    tpu.vector_store %arg4[%c0_8, %c0_9], %13 {strides = array<i32>} : memref<8x128xf32, #tpu.memory_space<vmem>>, vector<8x128xf32>,
    return
  }
  func.func @transform_0(%arg0: i32, %arg1: i32) -> (i32, i32) {
    %c1_i32 = arith.constant 1 : i32
    %0 = arith.muli %arg0, %c1_i32 : i32
    %1 = arith.addi %0, %arg1 : i32
    %c0_i32 = arith.constant 0 : i32
    %c0_i32_0 = arith.constant 0 : i32
    return %1, %c0_i32 : i32, i32
  }
  func.func @transform_1(%arg0: i32, %arg1: i32) -> (i32, i32) {
    %c1_i32 = arith.constant 1 : i32
    %0 = arith.muli %arg0, %c1_i32 : i32
    %1 = arith.addi %0, %arg1 : i32
    %c0_i32 = arith.constant 0 : i32
    %c0_i32_0 = arith.constant 0 : i32
    return %1, %c0_i32 : i32, i32
  }
  func.func @transform_2(%arg0: i32, %arg1: i32) -> (i32, i32) {
    %c0_i32 = arith.constant 0 : i32
    %c0_i32_0 = arith.constant 0 : i32
    return %arg0, %c0_i32 : i32, i32
  }
}

</mosaic_0001>

<bundles_post_ra>
// kernel: tpu_custom_call.1
= control target key start
LH: loop header
LB: loop body
LE: loop exit
PB: predicated region body
PF: predicated region fallthrough
CT: control target
= control target key end

     0   :  { %7 = vsyncpa [#allocation3], 0  ;;  %s230_s0 = inlined_call_operand.hbm [shape: f32[32,128], index: 0, kind: input, shape index: {}]   ;;  %s231_s1 = inlined_call_operand.hbm [shape: s8[32,128], index: 1, kind: input, shape index: {}]   ;;  %s232_s2 = inlined_call_operand.hbm [shape: f32[8,128], index: 2, kind: output, shape index: {}]  }
   0x1   :  { %8 = vsyncpa [#allocation6], 0 }
   0x2   :  { %9 = vsyncpa [#allocation4], 0  ;;  %s174_s9 = smov [#allocation2]   ;;  %s102_s13 = scalar_lea.hbm %s230_s0, 512 }
   0x3   :  { %s19_s10 = sshll.u32 %s174_s9, 4  ;;  %p103_p0 = scmp.ne.s32.totalorder %s230_s0, %s102_s13  ;;  %s20_s10 = int_to_ptr.vmem [resolvable:$true] %s19_s10 }
   0x4   :  { %p106_p1 = scmp.lt.u32.totalorder %s102_s13, %s230_s0 }
   0x6   :  { %p108_p2 = pnand %p106_p1, %p103_p0 }
   0x8   :  { %111 = shalt.err (!%p108_p2)
}
   0x9   :  { %s112_s18 = scalar_lea.vmem %s20_s10, 512  ;;  %p117_p4 = scmp.lt.s32.totalorder %s20_s10, %s20_s10 }
   0xa   :  { %p113_p3 = scmp.ne.s32.totalorder %s20_s10, %s112_s18  ;;  %p118_p5 = scmp.lt.s32.totalorder %s112_s18, %s112_s18 }
   0xc   :  { %p119_p6 = por %p118_p5, %p117_p4 }
   0xe   :  { %p120_p7 = pnand %p119_p6, %p113_p3 }
  0x10   :  { %123 = shalt.err (!%p120_p7)
}
  0x11   :  { %s175_s19 = smov 128   ;;  %s176_s20 = smov 8  }
  0x12   :  { %25 = dma.hbm_to_vmem [thread:$0]  %s230_s0, 512, %s20_s10, [#allocation3], %s175_s19, %s175_s19, %s176_s20  }
  0x13   :  { %s177_s23 = smov [#allocation5]   ;;  %s124_s27 = scalar_lea.hbm %s231_s1, 128 }
  0x14   :  { %s35_s24 = sshll.u32 %s177_s23, 4  ;;  %p125_p8 = scmp.ne.s32.totalorder %s231_s1, %s124_s27  ;;  %s36_s24 = int_to_ptr.vmem [resolvable:$true] %s35_s24 }
  0x15   :  { %p128_p9 = scmp.lt.u32.totalorder %s124_s27, %s231_s1 }
  0x17   :  { %p130_p10 = pnand %p128_p9, %p125_p8 }
  0x19   :  { %133 = shalt.err (!%p130_p10)
}
  0x1a   :  { %s134_s4 = scalar_lea.vmem %s36_s24, 128  ;;  %p139_p12 = scmp.lt.s32.totalorder %s36_s24, %s36_s24 }
  0x1b   :  { %p135_p11 = scmp.ne.s32.totalorder %s36_s24, %s134_s4  ;;  %p140_p13 = scmp.lt.s32.totalorder %s134_s4, %s134_s4 }
  0x1d   :  { %p141_p0 = por %p140_p13, %p139_p12 }
  0x1f   :  { %p142_p1 = pnand %p141_p0, %p135_p11 }
  0x21   :  { %145 = shalt.err (!%p142_p1)
}
  0x22   :  { %38 = dma.hbm_to_vmem [thread:$0]  %s231_s1, 128, %s36_s24, [#allocation6]  }
  0x23   :  { %168 = dma.done.wait [#allocation3], 512  }
  0x24   :  { %169 = vsyncadd [#allocation3], 4294966784 }
  0x25   :  { %170 = dma.done.wait [#allocation6], 128  }
  0x26   :  { %171 = vsyncadd [#allocation6], 4294967168  ;;  %v57_v0 = vld [vmem:[#allocation5] sm:$0xff]  ;;  %v54_v6 = vld [vmem:[#allocation2 + $0x8] sm:$0xff]  ;;  %s178_s1 = smov [#allocation7]  }
  0x27   :  { %v58_v1 = vunpack.c.0.s8 %v57_v0  ;;  %v59_v2 = vunpack.c.1.s8 %v57_v0  ;;  %v60_v3 = vunpack.c.2.s8 %v57_v0  ;;  %v61_v4 = vunpack.c.3.s8 %v57_v0  ;;  %v53_v5 = vld [vmem:[#allocation2] sm:$0xff]  ;;  %v55_v7 = vld [vmem:[#allocation2 + $0x10] sm:$0xff]  ;;  %v56_v12 = vld [vmem:[#allocation2 + $0x18] sm:$0xff]  ;;  %s86_s6 = sshll.u32 %s178_s1, 4  ;;  %s87_s6 = int_to_ptr.vmem [resolvable:$true] %s86_s6 }
  0x28   :  { %s146_s7 = scalar_lea.vmem %s87_s6, 128  ;;  %p151_p3 = scmp.lt.s32.totalorder %s87_s6, %s87_s6 }
  0x29   :  { %v62_v8 = vcvt.s32.f32 %v58_v1  ;;  %v63_v9 = vcvt.s32.f32 %v59_v2  ;;  %v64_v10 = vcvt.s32.f32 %v60_v3  ;;  %v65_v11 = vcvt.s32.f32 %v61_v4  ;;  %p147_p2 = scmp.ne.s32.totalorder %s87_s6, %s146_s7  ;;  %p152_p4 = scmp.lt.s32.totalorder %s146_s7, %s146_s7 }
  0x2b   :  { %vm66_vm0 = vcmp.gt.f32.partialorder %v62_v8, 0.0  ;;  %vm67_vm1 = vcmp.gt.f32.partialorder %v63_v9, 0.0  ;;  %vm68_vm2 = vcmp.gt.f32.partialorder %v64_v10, 0.0  ;;  %vm69_vm3 = vcmp.gt.f32.partialorder %v65_v11, 0.0  ;;  %p153_p5 = por %p152_p4, %p151_p3 }
  0x2c   :  { %v70_v13 = vsel %vm66_vm0, %v53_v5, 0.0  ;;  %v71_v14 = vsel %vm67_vm1, %v54_v6, 0.0  ;;  %v72_v15 = vsel %vm68_vm2, %v55_v7, 0.0  ;;  %v73_v17 = vsel %vm69_vm3, %v56_v12, 0.0 }
  0x2d   :  { %v75_v16 = vadd.f32 %v71_v14, %v70_v13  ;;  %p154_p6 = pnand %p153_p5, %p147_p2 }
  0x2f   :  { %v76_v18 = vadd.f32 %v75_v16, %v72_v15 }
  0x31   :  { %v77_v19 = vadd.f32 %v76_v18, %v73_v17 }
  0x33   :  { %79 = vst [vmem:[#allocation7] sm:$0xff] %v77_v19 }
  0x34   :  { %157 = shalt.err (!%p154_p6)
}
  0x35   :  { %s158_s10 = scalar_lea.hbm %s232_s2, 128 }
  0x36   :  { %p159_p7 = scmp.ne.s32.totalorder %s232_s2, %s158_s10  ;;  %p162_p8 = scmp.lt.u32.totalorder %s158_s10, %s232_s2 }
  0x38   :  { %p164_p9 = pnand %p162_p8, %p159_p7 }
  0x3a   :  { %167 = shalt.err (!%p164_p9)
}
  0x3b   :  { %89 = dma.vmem_to_hbm [thread:$0]  %s87_s6, 128, %s232_s2, [#allocation4]  }
  0x3c   :  { %172 = dma.done.wait [#allocation4], 128  }
  0x3d   :  { %173 = vsyncadd [#allocation4], 4294967168 }
  0x3e   :  { %93 = vsyncpa [#allocation3], 1 }
  0x3f   :  { %94 = vsyncpa [#allocation6], 1 }
  0x40   :  { %95 = vsyncpa [#allocation4], 1 }

</bundles_post_ra>
